<compile_context>
chip_gen: v6e
topology: v6e:2x2x1
jax: 0.10.0
libtpu: 0.0.40
codegen_flags: <defaults>
</compile_context>

<pallas_src>
import jax
import jax.numpy as jnp
from jax.experimental import pallas as pl
from jax.experimental.pallas import tpu as pltpu


def _discriminator_kernel(xT_ref,
                          w1_ref, b1_ref,
                          w2_ref, b2_ref,
                          w3_ref, b3_ref,
                          w4_ref, b4_ref,
                          out_ref):
    """One batch tile of the fused MLP in transposed (features, batch) layout."""
    xT = xT_ref[...]                      # (INPUT_DIM, TB) bf16

    # Read biases once per tile (columns broadcast along the lane/batch axis).
    b1 = b1_ref[...]                      # (DIM, 1) f32
    b2 = b2_ref[...]
    b3 = b3_ref[...]
    b4 = b4_ref[...]                      # (1, 1) f32

    h = jnp.dot(w1_ref[...], xT, preferred_element_type=jnp.float32) + b1
    h = jnp.maximum(h, 0.0).astype(jnp.bfloat16)

    h = jnp.dot(w2_ref[...], h, preferred_element_type=jnp.float32) + b2
    h = jnp.maximum(h, 0.0).astype(jnp.bfloat16)

    h = jnp.dot(w3_ref[...], h, preferred_element_type=jnp.float32) + b3
    h = jnp.maximum(h, 0.0).astype(jnp.bfloat16)

    out = jnp.dot(w4_ref[...], h, preferred_element_type=jnp.float32) + b4
    out_ref[...] = out.astype(out_ref.dtype)          # (1, TB), lane-dense store


def discriminator_forward(x, params, *, tb=256):
    """x: (B, INPUT_DIM) float32. params: PyTorch-layout weights/biases. Returns (B,)."""
    B, input_dim = x.shape
    dim = params["w1"].shape[0]

    grid_b = pl.cdiv(B, tb)
    b_pad = grid_b * tb

    # Transposed, lane-dense input: batch on the 128-lane axis; pad batch to TB multiple.
    xT = jnp.pad(x, ((0, b_pad - B), (0, 0))).T.astype(jnp.bfloat16)   # (INPUT_DIM, B_pad)

    w1 = params["w1"].astype(jnp.bfloat16)    # (DIM, INPUT_DIM)
    w2 = params["w2"].astype(jnp.bfloat16)    # (DIM, DIM)
    w3 = params["w3"].astype(jnp.bfloat16)    # (DIM, DIM)
    w4 = params["w4"].astype(jnp.bfloat16)    # (1, DIM)
    b1, b2, b3, b4 = params["b1"], params["b2"], params["b3"], params["b4"]  # f32 (out, 1)

    def const_spec(a):
        # Full-array block, same block every grid step -> stays VMEM-resident.
        return pl.BlockSpec(a.shape, lambda i: (0, 0))

    flops = 2 * b_pad * (input_dim * dim + dim * dim + dim * dim + dim * 1)
    bytes_accessed = (xT.size * 2
                      + sum(int(w.size) * 2 for w in (w1, w2, w3, w4))
                      + sum(int(b.size) * 4 for b in (b1, b2, b3, b4))
                      + b_pad * 4)

    out = pl.pallas_call(
        _discriminator_kernel,
        out_shape=jax.ShapeDtypeStruct((1, b_pad), jnp.float32),
        grid_spec=pltpu.PrefetchScalarGridSpec(
            num_scalar_prefetch=0,
            grid=(grid_b,),
            in_specs=[
                pl.BlockSpec((input_dim, tb), lambda i: (0, i)),   # pipelined x tile
                const_spec(w1), const_spec(b1),
                const_spec(w2), const_spec(b2),
                const_spec(w3), const_spec(b3),
                const_spec(w4), const_spec(b4),
            ],
            out_specs=pl.BlockSpec((1, tb), lambda i: (0, i)),
        ),
        compiler_params=pltpu.CompilerParams(
            dimension_semantics=("parallel",),     # batch-parallel: megacore / 2-TC v7x
            vmem_limit_bytes=32 * 1024 * 1024,
        ),
        cost_estimate=pl.CostEstimate(
            flops=flops, transcendentals=0, bytes_accessed=bytes_accessed),
    )(xT, w1, b1, w2, b2, w3, b3, w4, b4)

    return out[0, :B]    # (B,), matches PyTorch output.view(-1)


def init_params(key, input_dim, dim):
    """Mirrors nn.Linear's U(-1/sqrt(fan_in), 1/sqrt(fan_in)); PyTorch (out, in) layout."""
    def linear(k, fan_in, fan_out):
        kw, kb = jax.random.split(k)
        bound = 1.0 / float(fan_in) ** 0.5
        w = jax.random.uniform(kw, (fan_out, fan_in), jnp.float32, -bound, bound)
        b = jax.random.uniform(kb, (fan_out, 1), jnp.float32, -bound, bound)
        return w, b

    k1, k2, k3, k4 = jax.random.split(key, 4)
    w1, b1 = linear(k1, input_dim, dim)
    w2, b2 = linear(k2, dim, dim)
    w3, b3 = linear(k3, dim, dim)
    w4, b4 = linear(k4, dim, 1)
    return dict(w1=w1, b1=b1, w2=w2, b2=b2, w3=w3, b3=b3, w4=w4, b4=b4)


def _reference(x, p):
    """Pure-JAX f32 reference of the same module (PyTorch semantics)."""
    h = jnp.maximum(x @ p["w1"].T + p["b1"].T, 0.0)
    h = jnp.maximum(h @ p["w2"].T + p["b2"].T, 0.0)
    h = jnp.maximum(h @ p["w3"].T + p["b3"].T, 0.0)
    return (h @ p["w4"].T + p["b4"].T).reshape(-1)


if __name__ == "__main__":
    B = 300          # exercises both the batch grid (TB=256 -> 2 steps) and pad/slice-back
    INPUT_DIM = 32
    DIM = 32

    key = jax.random.PRNGKey(0)
    k_params, k_x = jax.random.split(key)

    params = init_params(k_params, INPUT_DIM, DIM)
    x = jax.random.normal(k_x, (B, INPUT_DIM), jnp.float32)

    out = discriminator_forward(x, params, tb=256)
    out = jax.block_until_ready(out)

    expected = _reference(x, params)
    assert out.shape == (B,)
    # bf16 MXU operands vs f32 reference -> loosened tolerance.
    assert jnp.allclose(out, expected, atol=5e-2, rtol=5e-2), \
        float(jnp.max(jnp.abs(out - expected)))

    print("KERNEL_OK")
</pallas_src>

<mosaic_0001>
module attributes {stable_mosaic.version = 11 : i64} {
  func.func @_discriminator_kernel(%arg0: i32, %arg1: memref<32x256xbf16, #tpu.memory_space<vmem>>, %arg2: memref<32x32xbf16, #tpu.memory_space<vmem>>, %arg3: memref<32x1xf32, #tpu.memory_space<vmem>>, %arg4: memref<32x32xbf16, #tpu.memory_space<vmem>>, %arg5: memref<32x1xf32, #tpu.memory_space<vmem>>, %arg6: memref<32x32xbf16, #tpu.memory_space<vmem>>, %arg7: memref<32x1xf32, #tpu.memory_space<vmem>>, %arg8: memref<1x32xbf16, #tpu.memory_space<vmem>>, %arg9: memref<1x1xf32, #tpu.memory_space<vmem>>, %arg10: memref<1x256xf32, #tpu.memory_space<vmem>>) attributes {dimension_semantics = [#tpu.dimension_semantics<parallel>], iteration_bounds = array<i64: 2>, scalar_prefetch = 0 : i64, scratch_operands = 0 : i64, tpu.core_type = #tpu.core_type<tc>, window_params = [{transform_indices = @transform_0, window_bounds = array<i64: 32, 256>}, {pipeline_mode = #tpu.pipeline_mode<synchronous>, transform_indices = @transform_1, window_bounds = array<i64: 32, 32>}, {pipeline_mode = #tpu.pipeline_mode<synchronous>, transform_indices = @transform_2, window_bounds = array<i64: 32, 1>}, {pipeline_mode = #tpu.pipeline_mode<synchronous>, transform_indices = @transform_3, window_bounds = array<i64: 32, 32>}, {pipeline_mode = #tpu.pipeline_mode<synchronous>, transform_indices = @transform_4, window_bounds = array<i64: 32, 1>}, {pipeline_mode = #tpu.pipeline_mode<synchronous>, transform_indices = @transform_5, window_bounds = array<i64: 32, 32>}, {pipeline_mode = #tpu.pipeline_mode<synchronous>, transform_indices = @transform_6, window_bounds = array<i64: 32, 1>}, {pipeline_mode = #tpu.pipeline_mode<synchronous>, transform_indices = @transform_7, window_bounds = array<i64: 1, 32>}, {pipeline_mode = #tpu.pipeline_mode<synchronous>, transform_indices = @transform_8, window_bounds = array<i64: 1, 1>}, {transform_indices = @transform_9, window_bounds = array<i64: 1, 256>}]} {
    %c0 = arith.constant 0 : index
    %c0_0 = arith.constant 0 : index
    %0 = vector.load %arg1[%c0, %c0_0] : memref<32x256xbf16, #tpu.memory_space<vmem>>, vector<32x256xbf16>
    %c0_1 = arith.constant 0 : index
    %c0_2 = arith.constant 0 : index
    %1 = vector.load %arg3[%c0_1, %c0_2] : memref<32x1xf32, #tpu.memory_space<vmem>>, vector<32x1xf32>
    %c0_3 = arith.constant 0 : index
    %c0_4 = arith.constant 0 : index
    %2 = vector.load %arg5[%c0_3, %c0_4] : memref<32x1xf32, #tpu.memory_space<vmem>>, vector<32x1xf32>
    %c0_5 = arith.constant 0 : index
    %c0_6 = arith.constant 0 : index
    %3 = vector.load %arg7[%c0_5, %c0_6] : memref<32x1xf32, #tpu.memory_space<vmem>>, vector<32x1xf32>
    %c0_7 = arith.constant 0 : index
    %c0_8 = arith.constant 0 : index
    %4 = vector.load %arg9[%c0_7, %c0_8] : memref<1x1xf32, #tpu.memory_space<vmem>>, vector<1x1xf32>
    %c0_9 = arith.constant 0 : index
    %c0_10 = arith.constant 0 : index
    %5 = vector.load %arg2[%c0_9, %c0_10] : memref<32x32xbf16, #tpu.memory_space<vmem>>, vector<32x32xbf16>
    %cst = arith.constant dense<0.000000e+00> : vector<32x256xf32>
    %6 = tpu.matmul %5, %0, %cst {dimension_numbers = #tpu.dot_dimension_numbers<[1], [0], [0], [1], [0, 0, 1, 1], [], []>} : vector<32x32xbf16>, vector<32x256xbf16>, vector<32x256xf32> -> vector<32x256xf32>
    %7 = vector.broadcast %1 : vector<32x1xf32> to vector<32x256xf32>
    %8 = arith.addf %6, %7 : vector<32x256xf32>
    %cst_11 = arith.constant 0.000000e+00 : f32
    %9 = vector.broadcast %cst_11 : f32 to vector<32x256xf32>
    %10 = arith.maximumf %8, %9 : vector<32x256xf32>
    %11 = arith.truncf %10 : vector<32x256xf32> to vector<32x256xbf16>
    %c0_12 = arith.constant 0 : index
    %c0_13 = arith.constant 0 : index
    %12 = vector.load %arg4[%c0_12, %c0_13] : memref<32x32xbf16, #tpu.memory_space<vmem>>, vector<32x32xbf16>
    %cst_14 = arith.constant dense<0.000000e+00> : vector<32x256xf32>
    %13 = tpu.matmul %12, %11, %cst_14 {dimension_numbers = #tpu.dot_dimension_numbers<[1], [0], [0], [1], [0, 0, 1, 1], [], []>} : vector<32x32xbf16>, vector<32x256xbf16>, vector<32x256xf32> -> vector<32x256xf32>
    %14 = vector.broadcast %2 : vector<32x1xf32> to vector<32x256xf32>
    %15 = arith.addf %13, %14 : vector<32x256xf32>
    %cst_15 = arith.constant 0.000000e+00 : f32
    %16 = vector.broadcast %cst_15 : f32 to vector<32x256xf32>
    %17 = arith.maximumf %15, %16 : vector<32x256xf32>
    %18 = arith.truncf %17 : vector<32x256xf32> to vector<32x256xbf16>
    %c0_16 = arith.constant 0 : index
    %c0_17 = arith.constant 0 : index
    %19 = vector.load %arg6[%c0_16, %c0_17] : memref<32x32xbf16, #tpu.memory_space<vmem>>, vector<32x32xbf16>
    %cst_18 = arith.constant dense<0.000000e+00> : vector<32x256xf32>
    %20 = tpu.matmul %19, %18, %cst_18 {dimension_numbers = #tpu.dot_dimension_numbers<[1], [0], [0], [1], [0, 0, 1, 1], [], []>} : vector<32x32xbf16>, vector<32x256xbf16>, vector<32x256xf32> -> vector<32x256xf32>
    %21 = vector.broadcast %3 : vector<32x1xf32> to vector<32x256xf32>
    %22 = arith.addf %20, %21 : vector<32x256xf32>
    %cst_19 = arith.constant 0.000000e+00 : f32
    %23 = vector.broadcast %cst_19 : f32 to vector<32x256xf32>
    %24 = arith.maximumf %22, %23 : vector<32x256xf32>
    %25 = arith.truncf %24 : vector<32x256xf32> to vector<32x256xbf16>
    %c0_20 = arith.constant 0 : index
    %c0_21 = arith.constant 0 : index
    %26 = vector.load %arg8[%c0_20, %c0_21] : memref<1x32xbf16, #tpu.memory_space<vmem>>, vector<1x32xbf16>
    %cst_22 = arith.constant dense<0.000000e+00> : vector<1x256xf32>
    %27 = tpu.matmul %26, %25, %cst_22 {dimension_numbers = #tpu.dot_dimension_numbers<[1], [0], [0], [1], [0, 0, 1, 1], [], []>} : vector<1x32xbf16>, vector<32x256xbf16>, vector<1x256xf32> -> vector<1x256xf32>
    %28 = vector.broadcast %4 : vector<1x1xf32> to vector<1x256xf32>
    %29 = arith.addf %27, %28 : vector<1x256xf32>
    %c0_23 = arith.constant 0 : index
    %c0_24 = arith.constant 0 : index
    %30 = vector.load %arg10[%c0_23, %c0_24] : memref<1x256xf32, #tpu.memory_space<vmem>>, vector<1x256xf32>
    tpu.vector_store %arg10[%c0_23, %c0_24], %29 {strides = array<i32>} : memref<1x256xf32, #tpu.memory_space<vmem>>, vector<1x256xf32>,
    return
  }
  func.func @transform_0(%arg0: i32) -> (i32, i32) {
    %c0_i32 = arith.constant 0 : i32
    %c0_i32_0 = arith.constant 0 : i32
    return %c0_i32, %arg0 : i32, i32
  }
  func.func @transform_1(%arg0: i32) -> (i32, i32) {
    %c0_i32 = arith.constant 0 : i32
    %c0_i32_0 = arith.constant 0 : i32
    %c0_i32_1 = arith.constant 0 : i32
    return %c0_i32, %c0_i32_0 : i32, i32
  }
  func.func @transform_2(%arg0: i32) -> (i32, i32) {
    %c0_i32 = arith.constant 0 : i32
    %c0_i32_0 = arith.constant 0 : i32
    %c0_i32_1 = arith.constant 0 : i32
    return %c0_i32, %c0_i32_0 : i32, i32
  }
  func.func @transform_3(%arg0: i32) -> (i32, i32) {
    %c0_i32 = arith.constant 0 : i32
    %c0_i32_0 = arith.constant 0 : i32
    %c0_i32_1 = arith.constant 0 : i32
    return %c0_i32, %c0_i32_0 : i32, i32
  }
  func.func @transform_4(%arg0: i32) -> (i32, i32) {
    %c0_i32 = arith.constant 0 : i32
    %c0_i32_0 = arith.constant 0 : i32
    %c0_i32_1 = arith.constant 0 : i32
    return %c0_i32, %c0_i32_0 : i32, i32
  }
  func.func @transform_5(%arg0: i32) -> (i32, i32) {
    %c0_i32 = arith.constant 0 : i32
    %c0_i32_0 = arith.constant 0 : i32
    %c0_i32_1 = arith.constant 0 : i32
    return %c0_i32, %c0_i32_0 : i32, i32
  }
  func.func @transform_6(%arg0: i32) -> (i32, i32) {
    %c0_i32 = arith.constant 0 : i32
    %c0_i32_0 = arith.constant 0 : i32
    %c0_i32_1 = arith.constant 0 : i32
    return %c0_i32, %c0_i32_0 : i32, i32
  }
  func.func @transform_7(%arg0: i32) -> (i32, i32) {
    %c0_i32 = arith.constant 0 : i32
    %c0_i32_0 = arith.constant 0 : i32
    %c0_i32_1 = arith.constant 0 : i32
    return %c0_i32, %c0_i32_0 : i32, i32
  }
  func.func @transform_8(%arg0: i32) -> (i32, i32) {
    %c0_i32 = arith.constant 0 : i32
    %c0_i32_0 = arith.constant 0 : i32
    %c0_i32_1 = arith.constant 0 : i32
    return %c0_i32, %c0_i32_0 : i32, i32
  }
  func.func @transform_9(%arg0: i32) -> (i32, i32) {
    %c0_i32 = arith.constant 0 : i32
    %c0_i32_0 = arith.constant 0 : i32
    return %c0_i32, %arg0 : i32, i32
  }
}

</mosaic_0001>

<bundles_post_ra>
// kernel: tpu_custom_call.1
= control target key start
LH: loop header
LB: loop body
LE: loop exit
PB: predicated region body
PF: predicated region fallthrough
CT: control target
= control target key end

     0   :  { %s1363_s0 = inlined_call_operand.vmem [shape: bf16[32,512], index: 0, kind: input, shape index: {}]   ;;  %s1364_s1 = inlined_call_operand.vmem [shape: bf16[32,32], index: 1, kind: input, shape index: {}]   ;;  %s1365_s2 = inlined_call_operand.vmem [shape: f32[32,1], index: 2, kind: input, shape index: {}]   ;;  %s1366_s3 = inlined_call_operand.vmem [shape: bf16[32,32], index: 3, kind: input, shape index: {}]   ;;  %s1367_s4 = inlined_call_operand.vmem [shape: f32[32,1], index: 4, kind: input, shape index: {}]   ;;  %s1368_s5 = inlined_call_operand.hbm [shape: bf16[32,32], index: 5, kind: input, shape index: {}]   ;;  %s1369_s6 = inlined_call_operand.vmem [shape: f32[32,1], index: 6, kind: input, shape index: {}]   ;;  %s1370_s7 = inlined_call_operand.vmem [shape: bf16[1,32], index: 7, kind: input, shape index: {}]   ;;  %s1371_s8 = inlined_call_operand.<no memory space> [shape: f32[1,1], index: 8, kind: input, shape index: {}]   ;;  %s1372_s9 = inlined_call_operand.hbm [shape: f32[1,512], index: 9, kind: output, shape index: {}]  }
   0x1   :  { %v14_v0 = vstv %s1371_s8 }
   0x2   :  { %15 = vst [vmem:[#allocation2] sm:$0x1] %v14_v0 }
   0x3   :  { %16 = vsyncpa [#allocation5], 0 }
   0x4   :  { %17 = vsyncpa [#allocation6], 0 }
   0x5   :  { %19 = vsyncpa [#allocation6 + $0x1], 0  ;;  %s1175_s11 = smov 0   ;;  %s1177_s12 = smov 0  }
   0x6   :  { %s1179_s13 = smov 0   ;;  %s1181_s14 = smov 0  }
   0x7 LB: > { %s1196_s8 = sadd.s32 4294967295, %s1114_s14   ;;  %s921_s15 = sadd.s32 4294967294, %s1114_s14   ;;  %s1114_s14 = sphi %s1181_s14, %s1383_s14   ;;  %s1110_s13 = sphi %s1179_s13, %s1382_s13   ;;  %s1106_s12 = sphi %s1177_s12, %s1381_s12   ;;  %s1102_s11 = sphi %s1175_s11, %s1380_s11  }
   0x8   : > { %s1200_s16 = sadd.s32 1, %s1114_s14   ;;  %s32_s17 = sadd.s32 1, %s1110_s13 }
   0x9   : > { %s29_s18 = ssub.s32 %s1114_s14, %s1200_s16  ;;  %p39_p0 = scmp.ne.s32.totalorder %s1110_s13, %s1106_s12 }
   0xa   : > { %p30_p1 = scmp.eq.s32.totalorder %s29_s18, 0  ;;  %p40_p2 = scmp.eq.s32.totalorder %s1114_s14, 0 }
   0xb   : > { %p237_p3 = scmp.eq.s32.totalorder %s1196_s8, 1  ;;  %p242_p4 = scmp.ne.s32.totalorder %s1106_s12, %s1102_s11 }
   0xc   : > { %s1212_s19 = scalar_select %p30_p1, %s1110_s13, %s32_s17  }
   0xd   : > { %p1214_p5 = por %p40_p2, %p39_p0  ;;  %p1218_p6 = por %p237_p3, %p39_p0 }
   0xe   : > { %p243_p7 = scmp.eq.s32.totalorder %s921_s15, 1  ;;  %p922_p8 = scmp.ge.s32.totalorder %s1114_s14, 1 }
   0xf   : > { %s1375_s21 = scalar_select %p1218_p6, 1, 0 }
  0x10   : > { %p250_p9 = scmp.lt.s32.totalorder %s1114_s14, 3  ;;  %p1224_p10 = por %p243_p7, %p242_p4 }
  0x11   : > { %p970_p11 = scmp.eq.s32.totalorder %s1196_s8, 0  ;;  %s1116_s24 = smov [#allocation4]  }
  0x12   : > { %s1376_s22 = scalar_select %p1224_p10, 1, 0 }
  0x13   : > { %p1229_p12 = pnand %p922_p8, %p250_p9  ;;  %s274_s25 = sshll.u32 %s1116_s24, 4  ;;  %s275_s25 = int_to_ptr.vmem [resolvable:$true] %s274_s25 }
  0x14   : > { %s1035_s26 = scalar_lea.vmem %s275_s25, 256  ;;  %p1043_p7 = scmp.lt.s32.totalorder %s275_s25, %s275_s25 }
  0x15   : > { %p962_p13 = pneg %p1229_p12  ;;  %p1036_p2 = scmp.ne.s32.totalorder %s275_s25, %s1035_s26 }
  0x16   : > { %p1044_p10 = scmp.lt.s32.totalorder %s1035_s26, %s1035_s26 }
  0x17   : > { %p963_p0 = pnand %p970_p11, %p962_p13 }
  0x18   : > { %p1045_p6 = por %p1044_p10, %p1043_p7 }
  0x19   : > { %p1026_p1 = pneg %p963_p0 }
  0x1b   : > { %p1038_p3 = pnand %p1036_p2, %p1026_p1 }
  0x1d   : > { %p1039_p4 = pneg %p1038_p3 }
  0x1f   : > { %p1046_p8 = pnand %p1045_p6, %p1039_p4 }
  0x21   : > { %1049 = shalt.err (!%p1046_p8)
}
  0x22   : > { %s1117_s27 = smov 64   ;;  %s1118_s28 = smov 4  }
  0x23   : > { %965 = dma.hbm_to_vmem [thread:$0]  (!%p963_p0), %s1368_s5, 256, %s275_s25, [#allocation5], %s1117_s27, %s1117_s27, %s1118_s28  }
  0x24   : > { %p924_p9 = scmp.ge.s32.totalorder %s1114_s14, 2 }
  0x26   : > { %293 = sbr.rel (%p924_p9) target bundleno = 49 (0x31), region = 48 }
  0x2b   : > { %296 = sbr.rel (!%p1214_p5) target bundleno = 49 (0x31), region = 52  ;;  %s298_s10 = sand.u32 (%p1214_p5), 1, %s1110_s13  }
  0x2c   : > { %s954_s15 = sshll.u32 (%p1214_p5), %s1114_s14, 3  ;;  %s925_s17 = sshll.u32 (%p1214_p5), %s298_s10, 5 }
  0x2d   : > { %s303_s26 = scalar_lea.vmem (%p1214_p5), %s1363_s0, %s954_s15  ;;  %s300_s25 = scalar_lea.vmem (%p1214_p5), [#allocation3], %s925_s17 }
  0x2e   : > { %v338_v1 = vld [vmem:[%s303_s26] sm:$0xff] (%p1214_p5)  ;;  %v340_v2 = vld [vmem:[%s303_s26 + $0x10] sm:$0xff] (%p1214_p5) }
  0x2f   : > { %v342_v3 = vld [vmem:[%s303_s26 + $0x20] sm:$0xff] (%p1214_p5)  ;;  %339 = vst [vmem:[%s300_s25] sm:$0xff] (%p1214_p5), %v338_v1  ;;  %341 = vst [vmem:[%s300_s25 + $0x8] sm:$0xff] (%p1214_p5), %v340_v2  ;;  %v344_v4 = vld [vmem:[%s303_s26 + $0x30] sm:$0xff] (%p1214_p5) }
  0x30   : > { %343 = vst [vmem:[%s300_s25 + $0x10] sm:$0xff] %v342_v3  ;;  %345 = vst [vmem:[%s300_s25 + $0x18] sm:$0xff] %v344_v4 }
  0x31 PF: > { %354 = sbr.rel (%p1229_p12) target bundleno = 945 (0x3b1), region = 90  ;;  %s1253_s20 = sand.u32 (!%p1229_p12), 1, %s1106_s12  }
  0x32   : > { %s929_s27 = sshll.u32 (!%p1229_p12), %s1253_s20, 5 }
  0x33   : > { %s359_s28 = scalar_lea.vmem (!%p1229_p12), [#allocation3], %s929_s27 }
  0x36   : > { %1093 = dma.done.wait (%p970_p11), [#allocation5], 256  }
  0x37   : > { %1095 = vsyncadd (%p970_p11), [#allocation5], 4294967040  ;;  %v1119_v5 = vmov 0   ;;  %v1012_v6 = vld [vmem:[%s359_s28 + $0x14] ss:$8 sps:$4 sm:$0xff]   ;;  %vm470_vm0 = vcmask 261120  }
  0x38   : > { %509 = vmatprep.mubr.bf16.mxu0 %v1119_v5  ;;  %1010 = vset.pattern.permute.xlu0 %v1119_v5  ;;  %v1014_v7 = vld [vmem:[%s359_s28 + $0x10] ss:$8 sps:$4 sm:$0xff]   ;;  %v1015_v8 = vld [vmem:[%s359_s28 + $0x4] ss:$8 sps:$4 sm:$0xff]   ;;  %v1017_v9 = vld [vmem:[%s359_s28] ss:$8 sps:$4 sm:$0xff]  }
  0x39   : > { %1011 = vset.pattern.permute.xlu1 %v1119_v5  ;;  %614 = vmatprep.mubr.bf16.mxu1 %v1119_v5  ;;  %v405_v10 = vld [vmem:[%s1365_s2 + $0x10] sm:$0xff]  ;;  %v403_v11 = vld [vmem:[%s1365_s2] sm:$0xff]  ;;  %v406_v13 = vld [vmem:[%s1365_s2 + $0x18] sm:$0xff]  ;;  %s931_s27 = sshll.u32 %s1253_s20, 1  ;;  %s955_s28 = sshll.u32 %s1196_s8, 5 }
  0x3a   : > { %489 = vmatprep.subr.bf16.mxu0 %v1012_v6  ;;  %432 = vperm.xlu0 %1010, %v405_v10   ;;  %v1018_v12 = vld [vmem:[%s1364_s1] sm:$0xff]   ;;  %v404_v14 = vld [vmem:[%s1365_s2 + $0x8] sm:$0xff]  ;;  %v409_v15 = vld [vmem:[%s1367_s4 + $0x10] sm:$0xff]  ;;  %s395_s23 = scalar_lea.vmem [#allocation7], %s931_s27  ;;  %s842_s15 = scalar_lea.hbm %s1372_s9, %s955_s28 }
  0x3b   : > { %490 = vmatpush1.bf16.msra.mxu0 %v1014_v7  ;;  %422 = vperm.xlu1 %1011, %v403_v11   ;;  %v410_v16 = vld [vmem:[%s1367_s4 + $0x18] sm:$0xff]  ;;  %v1019_v17 = vld [vmem:[%s1364_s1 + $0x8] sm:$0xff]   ;;  %v407_v18 = vld [vmem:[%s1367_s4] sm:$0xff]  ;;  %s844_s29 = sshll.u32 %s395_s23, 4  ;;  %s830_s17 = scalar_lea.sflag [#allocation6], %s1253_s20  ;;  %s845_s29 = int_to_ptr.vmem [resolvable:$true] %s844_s29 }
  0x3c   : > { %491 = vmatprep.subr.bf16.mxu0 %v1015_v8  ;;  %v408_v19 = vld [vmem:[%s1367_s4 + $0x8] sm:$0xff]  ;;  %v413_v20 = vld [vmem:[%s1369_s6 + $0x10] sm:$0xff]  ;;  %v414_v21 = vld [vmem:[%s1369_s6 + $0x18] sm:$0xff]  ;;  %s1050_s18 = scalar_lea.vmem %s845_s29, 32  ;;  %p1378_p6 = scmp.ne.s32.totalorder %s1375_s21, 0 }
  0x3d   : > { %v411_v22 = vld [vmem:[%s1369_s6] sm:$0xff]  ;;  %v412_v23 = vld [vmem:[%s1369_s6 + $0x8] sm:$0xff]  ;;  %p1051_p5 = scmp.ne.s32.totalorder %s845_s29, %s1050_s18  ;;  %s1121_s24 = smov [#allocation7]  }
  0x3e   : > { %437 = vperm.xlu0 %1010, %v406_v13   ;;  %v415_v24 = vld [vmem:[#allocation2] sm:$0x1]  ;;  %v1021_v58 = vld [vmem:[%s1366_s3 + $0x8] sm:$0xff]   ;;  %s1054_s26 = sshll.u32 %s1121_s24, 4  ;;  %s1055_s26 = int_to_ptr.vmem [resolvable:$false] %s1054_s26 }
  0x3f   : > { %492 = vmatpush1.bf16.msra.mxu0 %v1017_v9  ;;  %427 = vperm.xlu1 %1011, %v404_v14   ;;  %v1020_v57 = vld [vmem:[%s1366_s3] sm:$0xff]   ;;  %p1052_p10 = pnand %p1051_p5, %p1378_p6  ;;  %s1056_s8 = scalar_lea.vmem %s1055_s26, 64 }
  0x40   : > { %p1057_p12 = scmp.lt.s32.totalorder %s845_s29, %s1055_s26  ;;  %p1058_p13 = scmp.lt.s32.totalorder %s1056_s8, %s1050_s18 }
  0x41   : > { %p1053_p11 = pneg %p1052_p10 }
  0x42   : > { %938 = vmatmul.mubr.msk.bf16.vlgmr.msra.gmra.mxu0 %vm470_vm0, %v1018_v12  ;;  %558 = vperm.xlu0 %1010, %v409_v15   ;;  %p1059_p0 = por %p1058_p13, %p1057_p12 }
  0x43   : > { %519 = vmatprep.mubr.bf16.mxu0 %v1119_v5  ;;  %563 = vperm.xlu1 %1011, %v410_v16  }
  0x44   : > { %p1060_p1 = pnand %p1059_p0, %p1053_p11 }
  0x46   : > { %548 = vperm.xlu0 %1010, %v407_v18  }
  0x47   : > { %553 = vperm.xlu1 %1011, %v408_v19  }
  0x4a   : > { %939 = vmatmul.mubr.msk.bf16.gmra.mxu0 %vm470_vm0, %v1019_v17  ;;  %663 = vperm.xlu0 %1010, %v413_v20  }
  0x4b   : > { %719 = vmatprep.mubr.bf16.mxu0 %v1119_v5  ;;  %668 = vperm.xlu1 %1011, %v414_v21  }
  0x4e   : > { %653 = vperm.xlu0 %1010, %v411_v22  }
  0x4f   : > { %658 = vperm.xlu1 %1011, %v412_v23  }
  0x52   : > { %755 = vperm.xlu0 %1010, %v415_v24  }
  0xb5   : > { %v433_v28 = vpop.permute.xlu0 %432 }
  0xb6   : > { %v423_v29 = vpop.permute.xlu1 %422 }
  0xb9   : > { %v438_v33 = vpop.permute.xlu0 %437 }
  0xba   : > { %v428_v34 = vpop.permute.xlu1 %427 }
  0xbd   : > { %v559_v0 = vpop.permute.xlu0 %558 }
  0xbe   : > { %v564_v62 = vpop.permute.xlu1 %563 }
  0xc1   : > { %v549_v9 = vpop.permute.xlu0 %548 }
  0xc2   : > { %v554_v3 = vpop.permute.xlu1 %553 }
 0x102   : > { %v511_v25 = vpop.f32.mrf.mxu0 }
 0x103   : > { %v512_v48 = vadd.f32 %v511_v25, %v423_v29 }
 0x104   : > { %v513_v26 = vpop.f32.mrf.mxu0 }
 0x105   : > { %v514_v41 = vadd.f32 %v513_v26, %v423_v29  ;;  %v530_v55 = vmax.f32 %v512_v48, 0.0  ;;  %v1023_v29 = vld [vmem:[#allocation4 + $0x8] sm:$0xff]  }
 0x106   : > { %v515_v27 = vpop.f32.mrf.mxu0 }
 0x107   : > { %v516_v43 = vadd.f32 %v515_v27, %v428_v34  ;;  %v531_v50 = vmax.f32 %v514_v41, 0.0 }
 0x108   : > { %v517_v30 = vpop.f32.mrf.mxu0 }
 0x109   : > { %v518_v36 = vadd.f32 %v517_v30, %v428_v34  ;;  %v532_v52 = vmax.f32 %v516_v43, 0.0 }
 0x10a   : > { %v521_v31 = vpop.f32.mrf.mxu0 }
 0x10b   : > { %v522_v39 = vadd.f32 %v521_v31, %v433_v28  ;;  %v533_v45 = vmax.f32 %v518_v36, 0.0  ;;  %v538_v56 = vpack.c.bf16 %v532_v52, %v530_v55 }
 0x10c   : > { %v523_v32 = vpop.f32.mrf.mxu0 }
 0x10d   : > { %v524_v37 = vadd.f32 %v523_v32, %v433_v28  ;;  %v534_v49 = vmax.f32 %v522_v39, 0.0  ;;  %v539_v54 = vpack.c.bf16 %v533_v45, %v531_v50  ;;  %v1022_v28 = vld [vmem:[#allocation4] sm:$0xff]  }
 0x10e   : > { %v525_v35 = vpop.f32.mrf.mxu0 }
 0x10f   : > { %v526_v38 = vadd.f32 %v525_v35, %v438_v33  ;;  %v535_v46 = vmax.f32 %v524_v37, 0.0  ;;  %v664_v35 = vpop.permute.xlu0 %663 }
 0x110   : > { %v527_v40 = vpop.f32.mrf.mxu0 }
 0x111   : > { %v528_v42 = vadd.f32 %v527_v40, %v438_v33  ;;  %v536_v44 = vmax.f32 %v526_v38, 0.0  ;;  %v669_v33 = vpop.permute.xlu1 %668 }
 0x113   : > { %v537_v47 = vmax.f32 %v528_v42, 0.0  ;;  %v540_v53 = vpack.c.bf16 %v536_v44, %v534_v49  ;;  %v654_v43 = vpop.permute.xlu0 %653 }
 0x115   : > { %v541_v51 = vpack.c.bf16 %v537_v47, %v535_v46  ;;  %v659_v38 = vpop.permute.xlu1 %658 }
 0x117   : > { %594 = vmatprep.subr.bf16.mxu1 %v541_v51 }
 0x118   : > { %595 = vmatpush1.bf16.msra.mxu1 %v540_v53 }
 0x119   : > { %596 = vmatprep.subr.bf16.mxu1 %v539_v54 }
 0x11c   : > { %597 = vmatpush1.bf16.msra.mxu1 %v538_v56 }
 0x11f   : > { %942 = vmatmul.mubr.msk.bf16.vlgmr.msra.gmra.mxu1 %vm470_vm0, %v1020_v57 }
 0x120   : > { %624 = vmatprep.mubr.bf16.mxu1 %v1119_v5 }
 0x127   : > { %943 = vmatmul.mubr.msk.bf16.gmra.mxu1 %vm470_vm0, %v1021_v58 }
 0x128   : > { %797 = vmatprep.mubr.bf16.mxu1 %v1119_v5 }
 0x1df   : > { %v616_v59 = vpop.f32.mrf.mxu1 }
 0x1e0   : > { %v617_v19 = vadd.f32 %v616_v59, %v549_v9 }
 0x1e1   : > { %v618_v60 = vpop.f32.mrf.mxu1 }
 0x1e2   : > { %v619_v12 = vadd.f32 %v618_v60, %v549_v9  ;;  %v635_v26 = vmax.f32 %v617_v19, 0.0 }
 0x1e3   : > { %v620_v61 = vpop.f32.mrf.mxu1 }
 0x1e4   : > { %v621_v14 = vadd.f32 %v620_v61, %v554_v3  ;;  %v636_v21 = vmax.f32 %v619_v12, 0.0  ;;  %v752_v61 = vld [vmem:[%s1370_s7] sm:$0x1] }
 0x1e5   : > { %v622_v63 = vpop.f32.mrf.mxu1 }
 0x1e6   : > { %v623_v6 = vadd.f32 %v622_v63, %v554_v3  ;;  %v637_v23 = vmax.f32 %v621_v14, 0.0  ;;  %v756_v3 = vpop.permute.xlu0 %755 }
 0x1e7   : > { %v626_v1 = vpop.f32.mrf.mxu1 }
 0x1e8   : > { %v627_v10 = vadd.f32 %v626_v1, %v559_v0  ;;  %v638_v16 = vmax.f32 %v623_v6, 0.0  ;;  %v643_v27 = vpack.c.bf16 %v637_v23, %v635_v26 }
 0x1e9   : > { %v628_v2 = vpop.f32.mrf.mxu1 }
 0x1ea   : > { %v629_v7 = vadd.f32 %v628_v2, %v559_v0  ;;  %v639_v20 = vmax.f32 %v627_v10, 0.0  ;;  %v644_v25 = vpack.c.bf16 %v638_v16, %v636_v21  ;;  %v1120_v0 = vmov 1966171168  }
 0x1eb   : > { %v630_v4 = vpop.f32.mrf.mxu1  ;;  %v810_v1 = vunpack.c.l.s4 %v1120_v0 }
 0x1ec   : > { %v631_v8 = vadd.f32 %v630_v4, %v564_v62  ;;  %v640_v17 = vmax.f32 %v629_v7, 0.0 }
 0x1ed   : > { %v632_v11 = vpop.f32.mrf.mxu1  ;;  %v811_v4 = vunpack.c.0.s8 %v810_v1 }
 0x1ee   : > { %v633_v13 = vadd.f32 %v632_v11, %v564_v62  ;;  %v641_v15 = vmax.f32 %v631_v8, 0.0  ;;  %v758_v62 = vlaneseq }
 0x1f0   : > { %v642_v18 = vmax.f32 %v633_v13, 0.0  ;;  %v645_v24 = vpack.c.bf16 %v641_v15, %v639_v20  ;;  %v759_v63 = vshrl.u32 %v758_v62, 7  ;;  %vm826_vm1 = vcmp.lt.s32.totalorder %v758_v62, 256 }
 0x1f2   : > { %v646_v22 = vpack.c.bf16 %v642_v18, %v640_v17  ;;  %v760_v2 = vsub.s32 0, %v759_v63  ;;  %v814_v11 = vsub.s32 %v811_v4, %v759_v63 }
 0x1f4   : > { %699 = vmatprep.subr.bf16.mxu0 %v646_v22  ;;  %v761_v7 = vrot.slane %v756_v3, %v760_v2 }
 0x1f5   : > { %700 = vmatpush1.bf16.msra.mxu0 %v645_v24 }
 0x1f6   : > { %701 = vmatprep.subr.bf16.mxu0 %v644_v25 }
 0x1f9   : > { %702 = vmatpush1.bf16.msra.mxu0 %v643_v27 }
 0x1fc   : > { %946 = vmatmul.mubr.msk.bf16.vlgmr.msra.gmra.mxu0 %vm470_vm0, %v1022_v28 }
 0x1fd   : > { %729 = vmatprep.mubr.bf16.mxu0 %v1119_v5 }
 0x204   : > { %947 = vmatmul.mubr.msk.bf16.gmra.mxu0 %vm470_vm0, %v1023_v29 }
 0x2bc   : > { %v721_v30 = vpop.f32.mrf.mxu0 }
 0x2bd   : > { %v722_v52 = vadd.f32 %v721_v30, %v654_v43 }
 0x2be   : > { %v723_v31 = vpop.f32.mrf.mxu0 }
 0x2bf   : > { %v724_v5 = vadd.f32 %v723_v31, %v654_v43  ;;  %v740_v59 = vmax.f32 %v722_v52, 0.0 }
 0x2c0   : > { %v725_v32 = vpop.f32.mrf.mxu0 }
 0x2c1   : > { %v726_v47 = vadd.f32 %v725_v32, %v659_v38  ;;  %v741_v54 = vmax.f32 %v724_v5, 0.0 }
 0x2c2   : > { %v727_v34 = vpop.f32.mrf.mxu0 }
 0x2c3   : > { %v728_v40 = vadd.f32 %v727_v34, %v659_v38  ;;  %v742_v56 = vmax.f32 %v726_v47, 0.0 }
 0x2c4   : > { %v731_v36 = vpop.f32.mrf.mxu0 }
 0x2c5   : > { %v732_v44 = vadd.f32 %v731_v36, %v664_v35  ;;  %v743_v49 = vmax.f32 %v728_v40, 0.0  ;;  %v748_v60 = vpack.c.bf16 %v742_v56, %v740_v59 }
 0x2c6   : > { %v733_v37 = vpop.f32.mrf.mxu0 }
 0x2c7   : > { %v734_v41 = vadd.f32 %v733_v37, %v664_v35  ;;  %v744_v53 = vmax.f32 %v732_v44, 0.0  ;;  %v749_v58 = vpack.c.bf16 %v743_v49, %v741_v54 }
 0x2c8   : > { %v735_v39 = vpop.f32.mrf.mxu0 }
 0x2c9   : > { %v736_v42 = vadd.f32 %v735_v39, %v669_v33  ;;  %v745_v50 = vmax.f32 %v734_v41, 0.0 }
 0x2ca   : > { %v737_v45 = vpop.f32.mrf.mxu0 }
 0x2cb   : > { %v738_v46 = vadd.f32 %v737_v45, %v669_v33  ;;  %v746_v48 = vmax.f32 %v736_v42, 0.0 }
 0x2cd   : > { %v747_v51 = vmax.f32 %v738_v46, 0.0  ;;  %v750_v57 = vpack.c.bf16 %v746_v48, %v744_v53 }
 0x2cf   : > { %v751_v55 = vpack.c.bf16 %v747_v51, %v745_v50 }
 0x2d1   : > { %777 = vmatprep.subr.bf16.mxu1 %v751_v55 }
 0x2d2   : > { %778 = vmatpush1.bf16.msra.mxu1 %v750_v57 }
 0x2d3   : > { %779 = vmatprep.subr.bf16.mxu1 %v749_v58 }
 0x2d6   : > { %780 = vmatpush1.bf16.msra.mxu1 %v748_v60 }
 0x2d9   : > { %948 = vmatmul.mubr.msk.bf16.vlgmr.msra.gmra.mxu1 %vm470_vm0, %v752_v61 }
 0x399   : > { %v799_v6 = vpop.f32.mrf.mxu1 }
 0x39a   : > { %v800_v9 = vadd.f32 %v799_v6, %v761_v7 }
 0x39b   : > { %v801_v8 = vpop.f32.mrf.mxu1 }
 0x39c   : > { %v802_v10 = vadd.f32 %v801_v8, %v761_v7 }
 0x39d   : > { %v803_v12 = vpop.f32.mrf.mxu1 }
 0x39e   : > { %v808_v13 = vcombine.low %v800_v9, %v802_v10 }
 0x39f   : > { %v804_v14 = vpop.f32.mrf.mxu1 }
 0x3a0   : > { %v815_v15 = vrot.slane %v808_v13, %v814_v11 }
 0x3a2   : > { %v822_v16 = vrot.slane %v815_v15, %v814_v11 }
 0x3a4   : > { %828 = vst.msk [vmem:[%s395_s23] sm:$0x3] %vm826_vm1, %v822_v16 }
 0x3a5   : > { %1063 = shalt.err (!%p1060_p1)
}
 0x3a6   : > { %s1064_s25 = scalar_lea.hbm %s842_s15, 32  ;;  %s1068_s28 = scalar_lea.hbm %s1372_s9, 64 }
 0x3a7   : > { %p1065_p2 = scmp.ne.s32.totalorder %s842_s15, %s1064_s25  ;;  %p1069_p7 = scmp.lt.s32.totalorder %s842_s15, %s1372_s9 }
 0x3a8   : > { %p1070_p8 = scmp.lt.s32.totalorder %s1068_s28, %s1064_s25 }
 0x3a9   : > { %p1066_p3 = pnand %p1065_p2, %p1378_p6 }
 0x3aa   : > { %p1071_p5 = por %p1070_p8, %p1069_p7 }
 0x3ab   : > { %p1067_p4 = pneg %p1066_p3 }
 0x3ad   : > { %p1072_p10 = pnand %p1071_p5, %p1067_p4 }
 0x3af   : > { %1075 = shalt.err (!%p1072_p10)
}
 0x3b0   : > { %960 = dma.vmem_to_hbm [thread:$0]  (%p1378_p6), %s845_s29, 32, %s842_s15, %s830_s17  }
 0x3b1 PF: > { %s856_s10 = sand.u32 1, %s1102_s11   ;;  %p1379_p11 = scmp.ne.s32.totalorder %s1376_s22, 0 }
 0x3b2   : > { %s857_s18 = scalar_lea.sflag [#allocation6], %s856_s10 }
 0x3b3   : > { %p967_p12 = pnand %p924_p9, %p1379_p11 }
 0x3b5   : > { %p968_p13 = pneg %p967_p12 }
 0x3b7   : > { %1097 = dma.done.wait (%p968_p13), %s857_s18, 32  }
 0x3b8   : > { %1099 = vsyncadd (%p968_p13), %s857_s18, 4294967264  ;;  %p22_p0 = scmp.ge.s32.totalorder %s1200_s16, 4   ;;  %s1380_s11 = smov %s1106_s12 }
 0x3b9   : > { %s1381_s12 = smov %s1110_s13  ;;  %s1382_s13 = smov %s1212_s19 }
 0x3ba   : > { %s1383_s14 = smov %s1200_s16  ;;  %24 = sbr.rel (!%p22_p0) target bundleno = 7 (0x7), region = 139 }
 0x3bf   :  { %862 = vsyncpa [#allocation5], 1 }
 0x3c0   :  { %864 = vsyncpa [#allocation5 + $0x1], 1 }
 0x3c1   :  { %865 = vsyncpa [#allocation6], 1 }
 0x3c2   :  { %867 = vsyncpa [#allocation6 + $0x1], 1 }

</bundles_post_ra>
